<compile_context>
chip_gen: v6e
topology: v6e:2x2x1
jax: 0.10.0
libtpu: 0.0.40
codegen_flags: <defaults>
</compile_context>

<pallas_src>
import math

import jax
import jax.numpy as jnp
from jax import lax
from jax.experimental import pallas as pl
from jax.experimental.pallas import tpu as pltpu


def _round_up(n: int, m: int) -> int:
    return ((n + m - 1) // m) * m


def classifier_kernel(x_ref, w_ref, b_ref, o_ref):
    # x_ref: (tb, D) CLS rows for this batch tile (sliced in the wrapper).
    cls = x_ref[...]                                        # (tb, D)
    w = w_ref[...]                                          # (C, D), nn.Linear layout
    # Contract on D directly against the (C, D) layout (no w.T materialized).
    logits = lax.dot_general(
        cls, w,
        dimension_numbers=(((1,), (1,)), ((), ())),
        preferred_element_type=jnp.float32)                 # (tb, C) f32 accumulate
    o_ref[...] = (logits + b_ref[...]).astype(o_ref.dtype)


def transformer_classifier(x, weight, bias, *,
                           max_block_b: int = 1024,
                           min_grid_steps: int = 1):
    """x: (B, S, D), weight: (C, D), bias: (C,) -> logits (B, C).

    min_grid_steps: set to 2 on v7x (two TensorCores) when B is large enough
    that splitting the batch axis pays; leave at 1 on v5e/v6e.
    """
    B, S, D = x.shape
    C = weight.shape[0]
    itemsize = jnp.dtype(x.dtype).itemsize

    # Slice the CLS token in the wrapper: kernel gets a contiguous 2D array.
    x_cls = x[:, 0, :]                                      # (B, D)

    # Balanced batch tile: as few grid steps as possible (amortize ~0.35us/step)
    # while keeping padding minimal when B is not a multiple of max_block_b.
    n_steps = max(math.ceil(B / max_block_b), min_grid_steps)
    tb = _round_up(math.ceil(B / n_steps), 8)               # f32 sublane multiple
    Bp = _round_up(B, tb)
    if Bp != B:
        x_cls = jnp.pad(x_cls, ((0, Bp - B), (0, 0)))

    # Bias as a (1, C) row for in-kernel broadcast (metadata-only reshape).
    b2 = bias.reshape(1, C)

    grid = (Bp // tb,)

    out = pl.pallas_call(
        classifier_kernel,
        out_shape=jax.ShapeDtypeStruct((Bp, C), x.dtype),
        grid=grid,
        in_specs=[
            # Contiguous CLS tile; last dim is the full D -> clean (8,128) tiles.
            pl.BlockSpec((tb, D), lambda i: (i, 0)),
            # Weight / bias are constant across the grid -> stay resident in VMEM.
            pl.BlockSpec((C, D), lambda i: (0, 0)),
            pl.BlockSpec((1, C), lambda i: (0, 0)),
        ],
        out_specs=pl.BlockSpec((tb, C), lambda i: (i, 0)),
        compiler_params=pltpu.CompilerParams(
            # Batch axis is embarrassingly parallel -> megacore split on v7x
            # when grid has >= 2 steps; harmless no-op on v5e/v6e.
            dimension_semantics=("parallel",),
        ),
        cost_estimate=pl.CostEstimate(
            flops=2 * Bp * D * C,
            transcendentals=0,
            bytes_accessed=(Bp * D + C * D + C + Bp * C) * itemsize,
        ),
    )(x_cls, weight, b2)

    return out[:B, :]


if __name__ == "__main__":
    # Small shapes consistent with the module's forward (CLS at position 0).
    B, S, D, C = 2, 8, 32, 8   # batch, seq, emb_dim, num_classes

    key = jax.random.PRNGKey(0)
    kx, kw, kb = jax.random.split(key, 3)

    x = jax.random.normal(kx, (B, S, D), dtype=jnp.float32)

    # Deterministic nn.Linear-style init: U(-1/sqrt(D), 1/sqrt(D)).
    bound = 1.0 / (D ** 0.5)
    weight = jax.random.uniform(kw, (C, D), minval=-bound, maxval=bound,
                                dtype=jnp.float32)
    bias = jax.random.uniform(kb, (C,), minval=-bound, maxval=bound,
                              dtype=jnp.float32)

    out = transformer_classifier(x, weight, bias)
    out = jax.block_until_ready(out)

    # Reference check in plain JAX (same math as the PyTorch forward).
    ref = x[:, 0, :] @ weight.T + bias
    assert out.shape == (B, C)
    assert jnp.allclose(out, ref, atol=1e-5, rtol=1e-5)

    print("KERNEL_OK")
</pallas_src>

<mosaic_0001>
module attributes {stable_mosaic.version = 11 : i64} {
  func.func @classifier_kernel(%arg0: i32, %arg1: memref<8x32xf32, #tpu.memory_space<vmem>>, %arg2: memref<8x32xf32, #tpu.memory_space<vmem>>, %arg3: memref<1x8xf32, #tpu.memory_space<vmem>>, %arg4: memref<8x8xf32, #tpu.memory_space<vmem>>) attributes {dimension_semantics = [#tpu.dimension_semantics<parallel>], iteration_bounds = array<i64: 1>, scalar_prefetch = 0 : i64, scratch_operands = 0 : i64, tpu.core_type = #tpu.core_type<tc>, window_params = [{transform_indices = @transform_0, window_bounds = array<i64: 8, 32>}, {pipeline_mode = #tpu.pipeline_mode<synchronous>, transform_indices = @transform_1, window_bounds = array<i64: 8, 32>}, {pipeline_mode = #tpu.pipeline_mode<synchronous>, transform_indices = @transform_2, window_bounds = array<i64: 1, 8>}, {transform_indices = @transform_3, window_bounds = array<i64: 8, 8>}]} {
    %c0 = arith.constant 0 : index
    %c0_0 = arith.constant 0 : index
    %0 = vector.load %arg1[%c0, %c0_0] : memref<8x32xf32, #tpu.memory_space<vmem>>, vector<8x32xf32>
    %c0_1 = arith.constant 0 : index
    %c0_2 = arith.constant 0 : index
    %1 = vector.load %arg2[%c0_1, %c0_2] : memref<8x32xf32, #tpu.memory_space<vmem>>, vector<8x32xf32>
    %cst = arith.constant dense<0.000000e+00> : vector<8x8xf32>
    %2 = tpu.matmul %0, %1, %cst {dimension_numbers = #tpu.dot_dimension_numbers<[1], [1], [0], [0], [0, 0, 1, 0], [], []>} : vector<8x32xf32>, vector<8x32xf32>, vector<8x8xf32> -> vector<8x8xf32>
    %c0_3 = arith.constant 0 : index
    %c0_4 = arith.constant 0 : index
    %3 = vector.load %arg3[%c0_3, %c0_4] : memref<1x8xf32, #tpu.memory_space<vmem>>, vector<1x8xf32>
    %4 = vector.broadcast %3 : vector<1x8xf32> to vector<8x8xf32>
    %5 = arith.addf %2, %4 : vector<8x8xf32>
    %c0_5 = arith.constant 0 : index
    %c0_6 = arith.constant 0 : index
    %6 = vector.load %arg4[%c0_5, %c0_6] : memref<8x8xf32, #tpu.memory_space<vmem>>, vector<8x8xf32>
    tpu.vector_store %arg4[%c0_5, %c0_6], %5 {strides = array<i32>} : memref<8x8xf32, #tpu.memory_space<vmem>>, vector<8x8xf32>,
    return
  }
  func.func @transform_0(%arg0: i32) -> (i32, i32) {
    %c0_i32 = arith.constant 0 : i32
    %c0_i32_0 = arith.constant 0 : i32
    return %arg0, %c0_i32 : i32, i32
  }
  func.func @transform_1(%arg0: i32) -> (i32, i32) {
    %c0_i32 = arith.constant 0 : i32
    %c0_i32_0 = arith.constant 0 : i32
    %c0_i32_1 = arith.constant 0 : i32
    return %c0_i32, %c0_i32_0 : i32, i32
  }
  func.func @transform_2(%arg0: i32) -> (i32, i32) {
    %c0_i32 = arith.constant 0 : i32
    %c0_i32_0 = arith.constant 0 : i32
    %c0_i32_1 = arith.constant 0 : i32
    return %c0_i32, %c0_i32_0 : i32, i32
  }
  func.func @transform_3(%arg0: i32) -> (i32, i32) {
    %c0_i32 = arith.constant 0 : i32
    %c0_i32_0 = arith.constant 0 : i32
    return %arg0, %c0_i32 : i32, i32
  }
}

</mosaic_0001>

<bundles_post_ra>
// kernel: tpu_custom_call.1
= control target key start
LH: loop header
LB: loop body
LE: loop exit
PB: predicated region body
PF: predicated region fallthrough
CT: control target
= control target key end

     0   :  { %8 = vsyncpa [#allocation3], 0  ;;  %s261_s0 = inlined_call_operand.hbm [shape: f32[8,32], index: 0, kind: input, shape index: {}]   ;;  %s262_s1 = inlined_call_operand.hbm [shape: f32[8,32], index: 1, kind: input, shape index: {}]   ;;  %s263_s2 = inlined_call_operand.vmem [shape: f32[1,8], index: 2, kind: input, shape index: {}]   ;;  %s264_s3 = inlined_call_operand.hbm [shape: f32[8,8], index: 3, kind: output, shape index: {}]  }
   0x1   :  { %9 = vsyncpa [#allocation6], 0 }
   0x2   :  { %10 = vsyncpa [#allocation4], 0  ;;  %s224_s12 = smov [#allocation2]   ;;  %s225_s14 = smov [#allocation5]  }
   0x3   :  { %s17_s13 = sshll.u32 %s224_s12, 4  ;;  %s27_s15 = sshll.u32 %s225_s14, 4  ;;  %s18_s13 = int_to_ptr.vmem [resolvable:$true] %s17_s13  ;;  %s28_s15 = int_to_ptr.vmem [resolvable:$true] %s27_s15 }
   0x4   :  { %s166_s16 = scalar_lea.vmem %s18_s13, 128  ;;  %p171_p1 = scmp.lt.s32.totalorder %s18_s13, %s18_s13 }
   0x5   :  { %p167_p0 = scmp.ne.s32.totalorder %s18_s13, %s166_s16  ;;  %p172_p2 = scmp.lt.s32.totalorder %s166_s16, %s166_s16 }
   0x7   :  { %p173_p3 = por %p172_p2, %p171_p1 }
   0x9   :  { %p174_p4 = pnand %p173_p3, %p167_p0 }
   0xb   :  { %177 = shalt.err (!%p174_p4)
}
   0xc   :  { %20 = dma.hbm_to_vmem [thread:$0]  %s261_s0, 128, %s18_s13, [#allocation3]  }
   0xd   :  { %s186_s19 = scalar_lea.vmem %s28_s15, 128  ;;  %p191_p6 = scmp.lt.s32.totalorder %s28_s15, %s28_s15 }
   0xe   :  { %p187_p5 = scmp.ne.s32.totalorder %s28_s15, %s186_s19  ;;  %p192_p7 = scmp.lt.s32.totalorder %s186_s19, %s186_s19 }
  0x10   :  { %p193_p8 = por %p192_p7, %p191_p6 }
  0x12   :  { %p194_p9 = pnand %p193_p8, %p187_p5 }
  0x14   :  { %197 = shalt.err (!%p194_p9)
}
  0x15   :  { %30 = dma.hbm_to_vmem [thread:$0]  %s262_s1, 128, %s28_s15, [#allocation6]  }
  0x16   :  { %218 = dma.done.wait [#allocation3], 128  }
  0x17   :  { %219 = vsyncadd [#allocation3], 4294967168 }
  0x18   :  { %220 = dma.done.wait [#allocation6], 128  }
  0x19   :  { %221 = vsyncadd [#allocation6], 4294967168  ;;  %v226_v0 = vmov 0.0   ;;  %vm227_vm0 = vmmov 0   ;;  %vm48_vm1 = vcmask 261120   ;;  %v40_v1 = vld [vmem:[#allocation5] sm:$0xff] }
  0x1a   :  { %148 = vmatprep.subr.mxu0 %v226_v0  ;;  %150 = vmatprep.mubr.msk.f32.mxu0 %vm227_vm0, %v226_v0  ;;  %v39_v2 = vld [vmem:[#allocation2] sm:$0xff]  ;;  %s228_s23 = smov [#allocation7]   ;;  %vm125_vm2 = vcmask 64512  }
  0x1b   :  { %149 = vmatpush3.xpose.msk.msra.mxu0 %vm48_vm1, %v40_v1  ;;  %v143_v3 = vld [vmem:[%s263_s2] ss:$0 sm:$0xff]  ;;  %s133_s24 = sshll.u32 %s228_s23, 4  ;;  %s134_s24 = int_to_ptr.vmem [resolvable:$true] %s133_s24 }
  0x1c   :  { %s198_s1 = scalar_lea.vmem %s134_s24, 128  ;;  %p203_p11 = scmp.lt.s32.totalorder %s134_s24, %s134_s24 }
  0x1d   :  { %p199_p10 = scmp.ne.s32.totalorder %s134_s24, %s198_s1  ;;  %p204_p12 = scmp.lt.s32.totalorder %s198_s1, %s198_s1 }
  0x1e   :  { %151 = vmatmul.mubr.msk.f32.vlgmr.msra.gmra.mxu0 %vm48_vm1, %v39_v2 }
  0x1f   :  { %p205_p13 = por %p204_p12, %p203_p11 }
  0x21   :  { %p206_p0 = pnand %p205_p13, %p199_p10 }
  0xde   :  { %v121_v4 = vpop.f32.mrf.mxu0 }
  0xdf   :  { %v122_v5 = vadd.f32 %v143_v3, %v121_v4 }
  0xe0   :  { %v152_v6 = vpop.f32.mrf.mxu0 }
  0xe1   :  { %126 = vst.msk [vmem:[#allocation7] sm:$0xff] %vm125_vm2, %v122_v5 }
  0xe2   :  { %209 = shalt.err (!%p206_p0)
}
  0xe3   :  { %136 = dma.vmem_to_hbm [thread:$0]  %s134_s24, 128, %s264_s3, [#allocation4]  }
  0xe4   :  { %222 = dma.done.wait [#allocation4], 128  }
  0xe5   :  { %223 = vsyncadd [#allocation4], 4294967168 }
  0xe6   :  { %140 = vsyncpa [#allocation3], 1 }
  0xe7   :  { %141 = vsyncpa [#allocation6], 1 }
  0xe8   :  { %142 = vsyncpa [#allocation4], 1 }

</bundles_post_ra>
